<compile_context>
chip_gen: v7x
topology: tpu7x:2x2x1
jax: 0.10.0
libtpu: 0.0.40
codegen_flags: <defaults>
</compile_context>

<pallas_src>
import functools

import jax
import jax.numpy as jnp
from jax.experimental import pallas as pl
from jax.experimental.pallas import tpu as pltpu

_EPS = 1e-12  # matches torch.nn.functional.normalize default eps
_LANE = 128
_MAX_TILE = 32768  # lane cap per tile


def _isomax_kernel(alpha_ref, f_ref, p_ref, pn2_ref, o_ref, *, precision):
    # alpha_ref: (1,)   SMEM scalar = -|distance_scale| / temperature
    # f_ref:     (1, C, T) feature tile (channels on sublanes, pixels on lanes)
    # p_ref:     (C, C)    prototypes, already L2-normalized (f32)
    # pn2_ref:   (C, 1)    ||p_n||^2 precomputed in the wrapper
    # o_ref:     (1, C, T) output logits tile
    f = f_ref[0].astype(jnp.float32)       # (C, T)
    p_n = p_ref[...]                       # (C, C)
    pn2 = pn2_ref[...]                     # (C, 1)

    # Per-pixel L2 normalize over the channel (sublane) axis, fused rsqrt:
    # 1/sqrt(max(fsq, eps^2)) == 1/max(||f||, eps)  (PyTorch F.normalize).
    fsq = jnp.sum(f * f, axis=0, keepdims=True)              # (1, T)
    inv = jax.lax.rsqrt(jnp.maximum(fsq, _EPS * _EPS))        # (1, T)
    f_n = f * inv                                             # (C, T)
    fn2 = fsq * (inv * inv)  # ||f_n||^2; un-clamped fsq keeps zero pixels exact

    # Cross term on the MXU: (C, C) @ (C, T) -> (C, T), f32 accumulation.
    cross = jnp.dot(p_n, f_n,
                    preferred_element_type=jnp.float32,
                    precision=precision)

    d2 = jnp.maximum(fn2 + pn2 - 2.0 * cross, 0.0)
    dist = jnp.sqrt(d2)                                       # (C, T)

    o_ref[0] = (alpha_ref[0] * dist).astype(o_ref.dtype)


def _choose_spatial_tile(HW, C, in_itemsize, out_itemsize, total_budget_bytes,
                         min_tiles):
    """Pick the lane-tile size T (multiple of 128 where possible)."""
    if HW <= _LANE:
        return HW  # full (possibly narrow) spatial extent — single tile
    # Estimated VMEM footprint per lane of tile: double-buffered in + out
    # plus ~3 f32 (C,T) intermediates (f32 copy, f_n for the MXU, dot result).
    per_lane = C * (2 * in_itemsize + 2 * out_itemsize + 3 * 4)
    t_budget = max(_LANE, (total_budget_bytes // per_lane) // _LANE * _LANE)
    t_cap = min(t_budget, _MAX_TILE, (HW // _LANE) * _LANE)
    if min_tiles > 1:
        # Guarantee >= min_tiles grid steps along the spatial axis (v7x 2-TC).
        t_cap = min(t_cap, max(_LANE, (HW // min_tiles) // _LANE * _LANE))
    # Prefer the largest multiple of 128 that divides HW exactly -> every
    # output tile is a full, unmasked lane-dense store.
    t = t_cap
    while t >= _LANE:
        if HW % t == 0:
            return t
        t -= _LANE
    return t_cap  # no exact divisor; last tile is masked (still correct)


def isomax_plus_forward(x_nchw, prototypes, distance_scale, temperature=1.0):
    """x_nchw: (B, C, H, W) with C == num_classes == num_features."""
    B, C, H, W = x_nchw.shape
    num_classes, num_features = prototypes.shape
    assert C == num_classes == num_features, (
        "module semantics require C == num_classes == num_features")

    HW = H * W
    x3 = x_nchw.reshape(B, C, HW)  # free reshape — no HBM transpose pass

    # Hoisted, tiny parameter preprocessing (done once, outside the grid loop).
    p = prototypes.astype(jnp.float32)
    p_n = p / jnp.maximum(jnp.linalg.norm(p, axis=1, keepdims=True), _EPS)
    pn2 = jnp.sum(p_n * p_n, axis=1, keepdims=True)           # (C, 1), ~= 1
    alpha = (-jnp.abs(distance_scale.astype(jnp.float32)) / temperature).reshape(1)

    in_itemsize = jnp.dtype(x_nchw.dtype).itemsize
    out_itemsize = in_itemsize  # output dtype == input dtype

    # Chip-aware VMEM budget: ~75% of per-core VMEM (v7x 64 MiB -> ~48 MiB,
    # v5e/v6e 128 MiB -> 96 MiB cap), with a conservative fallback.
    try:
        vmem_cap = int(pltpu.get_tpu_info().vmem_capacity_bytes)
    except Exception:
        vmem_cap = 64 * 1024 * 1024
    if vmem_cap < 16 * 1024 * 1024:
        vmem_cap = 64 * 1024 * 1024
    vmem_limit = min((vmem_cap * 3) // 4, 96 * 1024 * 1024)

    min_tiles = 2 if B == 1 else 1
    T = _choose_spatial_tile(HW, C, in_itemsize, out_itemsize,
                             int(vmem_limit * 0.8), min_tiles)
    grid = (B, pl.cdiv(HW, T))

    # HIGHEST precision while the matmul is hidden under DMA; HIGH for large C
    # where MXU pass count starts to matter.
    prec = (jax.lax.Precision.HIGHEST if C <= 256 else jax.lax.Precision.HIGH)
    kernel = functools.partial(_isomax_kernel, precision=prec)

    out3 = pl.pallas_call(
        kernel,
        out_shape=jax.ShapeDtypeStruct((B, C, HW), x_nchw.dtype),
        grid=grid,
        in_specs=[
            pl.BlockSpec(memory_space=pltpu.MemorySpace.SMEM),            # alpha (1,)
            pl.BlockSpec((1, C, T), lambda b, i: (b, 0, i)),              # feature tile
            pl.BlockSpec((num_classes, num_features), lambda b, i: (0, 0)),  # prototypes
            pl.BlockSpec((num_classes, 1), lambda b, i: (0, 0)),          # ||p_n||^2
        ],
        out_specs=pl.BlockSpec((1, num_classes, T), lambda b, i: (b, 0, i)),
        compiler_params=pltpu.CompilerParams(
            dimension_semantics=("parallel", "parallel"),
            vmem_limit_bytes=int(vmem_limit)),
    )(alpha, x3, p_n, pn2)

    return out3.reshape(B, num_classes, H, W)


def _reference(x_nchw, prototypes, distance_scale, temperature=1.0):
    # Mirrors the PyTorch module (exact-diff cdist) in pure JAX.
    B, C, H, W = x_nchw.shape
    f = jnp.transpose(x_nchw, (0, 2, 3, 1)).reshape(-1, C).astype(jnp.float32)
    f_n = f / jnp.maximum(jnp.linalg.norm(f, axis=1, keepdims=True), _EPS)
    p = prototypes.astype(jnp.float32)
    p_n = p / jnp.maximum(jnp.linalg.norm(p, axis=1, keepdims=True), _EPS)
    diff = f_n[:, None, :] - p_n[None, :, :]
    dist = jnp.sqrt(jnp.sum(diff * diff, axis=-1))
    logits = -jnp.abs(distance_scale[0]) * dist / temperature
    return jnp.transpose(logits.reshape(B, H, W, C), (0, 3, 1, 2))


if __name__ == "__main__":
    key = jax.random.PRNGKey(0)
    k_x, k_p = jax.random.split(key)

    # Small shapes consistent with the module: channel dim == num_classes == num_features.
    B, num_classes, H, W = 2, 4, 16, 16
    num_features = num_classes
    temperature = 1.0

    x = jax.random.normal(k_x, (B, num_classes, H, W), dtype=jnp.float32)

    # Deterministic parameter init (mirrors nn.init.normal_ / constant_).
    prototypes = jax.random.normal(k_p, (num_classes, num_features), dtype=jnp.float32)
    distance_scale = jnp.ones((1,), dtype=jnp.float32)

    out = isomax_plus_forward(x, prototypes, distance_scale, temperature)
    out = jax.block_until_ready(out)

    ref = _reference(x, prototypes, distance_scale, temperature)
    assert out.shape == (B, num_classes, H, W)
    assert jnp.allclose(out, ref, atol=3e-5, rtol=3e-5), "mismatch vs pure-JAX reference"

    print("KERNEL_OK")
</pallas_src>

<mosaic_0001>
module attributes {stable_mosaic.version = 11 : i64} {
  func.func @_isomax_kernel(%arg0: i32, %arg1: i32, %arg2: memref<1xf32, #tpu.memory_space<smem>>, %arg3: memref<1x4x256xf32, #tpu.memory_space<vmem>>, %arg4: memref<4x4xf32, #tpu.memory_space<vmem>>, %arg5: memref<4x1xf32, #tpu.memory_space<vmem>>, %arg6: memref<1x4x256xf32, #tpu.memory_space<vmem>>) attributes {dimension_semantics = [#tpu.dimension_semantics<parallel>, #tpu.dimension_semantics<parallel>], iteration_bounds = array<i64: 2, 1>, scalar_prefetch = 0 : i64, scratch_operands = 0 : i64, tpu.core_type = #tpu.core_type<tc>, window_params = [{transform_indices = @transform_0, window_bounds = array<i64: 1>}, {transform_indices = @transform_1, window_bounds = array<i64: 1, 4, 256>}, {pipeline_mode = #tpu.pipeline_mode<synchronous>, transform_indices = @transform_2, window_bounds = array<i64: 4, 4>}, {pipeline_mode = #tpu.pipeline_mode<synchronous>, transform_indices = @transform_3, window_bounds = array<i64: 4, 1>}, {transform_indices = @transform_4, window_bounds = array<i64: 1, 4, 256>}]} {
    %c0 = arith.constant 0 : index
    %c0_0 = arith.constant 0 : index
    %c0_1 = arith.constant 0 : index
    %0 = vector.load %arg3[%c0, %c0_0, %c0_1] : memref<1x4x256xf32, #tpu.memory_space<vmem>>, vector<1x4x256xf32>
    %1 = vector.shape_cast %0 : vector<1x4x256xf32> to vector<4x256xf32>
    %c0_2 = arith.constant 0 : index
    %c0_3 = arith.constant 0 : index
    %2 = vector.load %arg4[%c0_2, %c0_3] : memref<4x4xf32, #tpu.memory_space<vmem>>, vector<4x4xf32>
    %c0_4 = arith.constant 0 : index
    %c0_5 = arith.constant 0 : index
    %3 = vector.load %arg5[%c0_4, %c0_5] : memref<4x1xf32, #tpu.memory_space<vmem>>, vector<4x1xf32>
    %4 = arith.mulf %1, %1 : vector<4x256xf32>
    %cst = arith.constant dense<0.000000e+00> : vector<256xf32>
    %5 = vector.multi_reduction <add>, %4, %cst [0] : vector<4x256xf32> to vector<256xf32>
    %6 = vector.shape_cast %5 : vector<256xf32> to vector<1x256xf32>
    %cst_6 = arith.constant 1.000000e-24 : f32
    %7 = vector.broadcast %cst_6 : f32 to vector<1x256xf32>
    %8 = arith.maximumf %6, %7 : vector<1x256xf32>
    %9 = math.rsqrt %8 : vector<1x256xf32>
    %10 = vector.broadcast %9 : vector<1x256xf32> to vector<4x256xf32>
    %11 = arith.mulf %1, %10 : vector<4x256xf32>
    %12 = arith.mulf %9, %9 : vector<1x256xf32>
    %13 = arith.mulf %6, %12 : vector<1x256xf32>
    %cst_7 = arith.constant dense<0.000000e+00> : vector<4x256xf32>
    %14 = tpu.matmul %2, %11, %cst_7 {dimension_numbers = #tpu.dot_dimension_numbers<[1], [0], [0], [1], [0, 0, 1, 1], [], []>, precision = #tpu.contract_precision<fp32>} : vector<4x4xf32>, vector<4x256xf32>, vector<4x256xf32> -> vector<4x256xf32>
    %15 = vector.broadcast %13 : vector<1x256xf32> to vector<4x256xf32>
    %16 = vector.broadcast %3 : vector<4x1xf32> to vector<4x256xf32>
    %17 = arith.addf %15, %16 : vector<4x256xf32>
    %cst_8 = arith.constant 2.000000e+00 : f32
    %18 = vector.broadcast %cst_8 : f32 to vector<4x256xf32>
    %19 = arith.mulf %18, %14 : vector<4x256xf32>
    %20 = arith.subf %17, %19 : vector<4x256xf32>
    %cst_9 = arith.constant 0.000000e+00 : f32
    %21 = vector.broadcast %cst_9 : f32 to vector<4x256xf32>
    %22 = arith.maximumf %20, %21 : vector<4x256xf32>
    %23 = math.sqrt %22 : vector<4x256xf32>
    %c0_10 = arith.constant 0 : index
    %24 = memref.load %arg2[%c0_10] : memref<1xf32, #tpu.memory_space<smem>>
    %25 = vector.broadcast %24 : f32 to vector<4x256xf32>
    %26 = arith.mulf %25, %23 : vector<4x256xf32>
    %c0_11 = arith.constant 0 : index
    %c0_12 = arith.constant 0 : index
    %c0_13 = arith.constant 0 : index
    %27 = vector.load %arg6[%c0_11, %c0_12, %c0_13] : memref<1x4x256xf32, #tpu.memory_space<vmem>>, vector<1x4x256xf32>
    %28 = vector.shape_cast %27 : vector<1x4x256xf32> to vector<4x256xf32>
    %29 = vector.shape_cast %26 : vector<4x256xf32> to vector<1x4x256xf32>
    tpu.vector_store %arg6[%c0_11, %c0_12, %c0_13], %29 {strides = array<i32>} : memref<1x4x256xf32, #tpu.memory_space<vmem>>, vector<1x4x256xf32>,
    return
  }
  func.func @transform_0(%arg0: i32, %arg1: i32) -> i32 {
    %c0_i32 = arith.constant 0 : i32
    %c0_i32_0 = arith.constant 0 : i32
    return %c0_i32 : i32
  }
  func.func @transform_1(%arg0: i32, %arg1: i32) -> (i32, i32, i32) {
    %c0_i32 = arith.constant 0 : i32
    %c0_i32_0 = arith.constant 0 : i32
    return %arg0, %c0_i32, %arg1 : i32, i32, i32
  }
  func.func @transform_2(%arg0: i32, %arg1: i32) -> (i32, i32) {
    %c0_i32 = arith.constant 0 : i32
    %c0_i32_0 = arith.constant 0 : i32
    %c0_i32_1 = arith.constant 0 : i32
    return %c0_i32, %c0_i32_0 : i32, i32
  }
  func.func @transform_3(%arg0: i32, %arg1: i32) -> (i32, i32) {
    %c0_i32 = arith.constant 0 : i32
    %c0_i32_0 = arith.constant 0 : i32
    %c0_i32_1 = arith.constant 0 : i32
    return %c0_i32, %c0_i32_0 : i32, i32
  }
  func.func @transform_4(%arg0: i32, %arg1: i32) -> (i32, i32, i32) {
    %c0_i32 = arith.constant 0 : i32
    %c0_i32_0 = arith.constant 0 : i32
    return %arg0, %c0_i32, %arg1 : i32, i32, i32
  }
}

</mosaic_0001>

<bundles_post_ra>
// kernel: tpu_custom_call.1
= control target key start
LH: loop header
LB: loop body
LE: loop exit
PB: predicated region body
PF: predicated region fallthrough
CT: control target
= control target key end

     0   :  { %s1320_s0 = inlined_call_operand.<no memory space> [shape: f32[1], index: 0, kind: input, shape index: {}]   ;;  %s1321_s1 = inlined_call_operand.hbm [shape: f32[2,4,256], index: 1, kind: input, shape index: {}]   ;;  %s1322_s2 = inlined_call_operand.vmem [shape: f32[4,4], index: 2, kind: input, shape index: {}]   ;;  %s1323_s3 = inlined_call_operand.vmem [shape: f32[4,1], index: 3, kind: input, shape index: {}]   ;;  %s1324_s4 = inlined_call_operand.hbm [shape: f32[2,4,256], index: 4, kind: output, shape index: {}]  }
   0x1   :  { %9 = sst [smem:[#allocation2]] %s1320_s0 }
   0x2   :  { %10 = vsyncpa [#allocation4], 0 }
   0x3   :  { %12 = vsyncpa [#allocation4 + $0x1], 0 }
   0x4   :  { %13 = vsyncpa [#allocation5], 0 }
   0x5   :  { %15 = vsyncpa [#allocation5 + $0x1], 0  ;;  %s1128_s17 = smov 0   ;;  %s1130_s18 = smov 0  }
   0x6   :  { %s1132_s19 = smov 0   ;;  %s1134_s20 = smov 0  }
   0x7   :  { %s1136_s21 = smov 0   ;;  %s1138_s22 = smov 0  }
   0x8 LB: > { %s882_s0 = sadd.s32 4294967295, %s1094_s22   ;;  %s883_s23 = sadd.s32 4294967294, %s1094_s22   ;;  %s1094_s22 = sphi %s1138_s22, %s21_s22   ;;  %s1090_s21 = sphi %s1136_s21, %s1340_s21   ;;  %s1086_s20 = sphi %s1134_s20, %s1339_s20   ;;  %s1082_s19 = sphi %s1132_s19, %s1338_s19   ;;  %s1078_s18 = sphi %s1130_s18, %s1337_s18   ;;  %s1074_s17 = sphi %s1128_s17, %s1336_s17  }
   0x9   : > { %s33_s24 = sadd.s32 1, %s1090_s21  ;;  %s63_s25 = sadd.s32 1, %s1082_s19 }
   0xa   : > { %p35_p0 = scmp.ge.s32.totalorder %s33_s24, 2  ;;  %p70_p1 = scmp.ne.s32.totalorder %s1082_s19, %s1078_s18 }
   0xb   : > { %p71_p2 = scmp.eq.s32.totalorder %s1094_s22, 0  ;;  %p76_p3 = scmp.ne.s32.totalorder %s1078_s18, %s1074_s17 }
   0xc   : > { %s1342_s24 = smov (%p35_p0, %s33_s24), 0  ;;  %p77_p5 = scmp.eq.s32.totalorder %s882_s0, 0 }
   0xd   : > { %p1169_p4 = por %p71_p2, %p70_p1  ;;  %s58_s27 = ssub.s32 %s1090_s21, %s1342_s24 }
   0xe   : > { %p144_p6 = scmp.eq.s32.totalorder %s882_s0, 1  ;;  %p61_p7 = scmp.eq.s32.totalorder %s58_s27, 0 }
   0xf   : > { %p1175_p8 = por %p77_p5, %p76_p3  ;;  %p150_p10 = scmp.eq.s32.totalorder %s883_s23, 1 }
  0x10   : > { %p1179_p9 = por %p144_p6, %p70_p1  ;;  %p921_p13 = scmp.lt.s32.totalorder %s1094_s22, 2 }
  0x11   : > { %s1184_s30 = scalar_select %p61_p7, %s1082_s19, %s63_s25  }
  0x12   : > { %s1328_s29 = scalar_select %p1179_p9, 1, 0 }
  0x13   : > { %p1186_p11 = por %p150_p10, %p76_p3  ;;  %s179_s6 = sand.u32 1, %s1082_s19  }
  0x14   : > { %s886_s7 = sshll.u32 %s179_s6, 3  ;;  %s897_s8 = sshll.u32 %s1090_s21, 7 }
  0x15   : > { %s1329_s5 = scalar_select %p1186_p11, 1, 0 }
  0x16   : > { %s1197_s11 = scalar_lea.hbm %s1321_s1, %s897_s8  ;;  %s183_s12 = scalar_lea.vmem [#allocation3], %s886_s7 }
  0x17   : > { %s193_s13 = sshll.u32 %s183_s12, 4  ;;  %p1203_p0 = pnand %p921_p13, %p1169_p4  ;;  %s1199_s13 = int_to_ptr.vmem [resolvable:$true] %s193_s13 }
  0x18   : > { %s180_s15 = scalar_lea.sflag [#allocation4], %s179_s6  ;;  %s982_s16 = scalar_lea.hbm %s1197_s11, 128 }
  0x19   : > { %p983_p3 = scmp.ne.s32.totalorder %s1197_s11, %s982_s16  ;;  %p984_p5 = pneg %p1203_p0 }
  0x1a   : > { %s987_s25 = scalar_lea.hbm %s1321_s1, 256  ;;  %p988_p4 = scmp.lt.u32.totalorder %s1197_s11, %s1321_s1 }
  0x1b   : > { %p985_p6 = pnand %p984_p5, %p983_p3  ;;  %p989_p10 = scmp.lt.u32.totalorder %s987_s25, %s982_s16 }
  0x1c   : > { %p991_p12 = scmp.lt.u32.totalorder %s982_s16, %s1197_s11 }
  0x1d   : > { %p986_p7 = pneg %p985_p6  ;;  %p990_p13 = por %p989_p10, %p988_p4 }
  0x1f   : > { %p992_p1 = por %p991_p12, %p990_p13 }
  0x21   : > { %p993_p2 = pnand %p992_p1, %p986_p7 }
  0x23   : > { %996 = shalt.err (!%p993_p2)
}
  0x24   : > { %s997_s6 = scalar_lea.vmem %s1199_s13, 128  ;;  %s1096_s7 = smov [#allocation3]  }
  0x25   : > { %p998_p3 = scmp.ne.s32.totalorder %s1199_s13, %s997_s6  ;;  %s1002_s8 = sshll.u32 %s1096_s7, 4  ;;  %s1003_s8 = int_to_ptr.vmem [resolvable:$false] %s1002_s8 }
  0x26   : > { %s1004_s9 = scalar_lea.vmem %s1003_s8, 256  ;;  %p1005_p9 = scmp.lt.s32.totalorder %s1199_s13, %s1003_s8 }
  0x27   : > { %p1000_p6 = pnand %p998_p3, %p984_p5  ;;  %p1006_p4 = scmp.lt.s32.totalorder %s1004_s9, %s997_s6 }
  0x29   : > { %p1001_p11 = pneg %p1000_p6  ;;  %p1007_p10 = por %p1006_p4, %p1005_p9 }
  0x2b   : > { %p1008_p12 = pnand %p1007_p10, %p1001_p11 }
  0x2d   : > { %1011 = shalt.err (!%p1008_p12)
}
  0x2e   : > { %916 = dma.hbm_to_vmem [thread:$0]  (!%p1203_p0), %s1197_s11, 128, %s1199_s13, %s180_s15  }
  0x2f   : > { %p1331_p1 = scmp.lt.s32.totalorder %s1094_s22, 3  ;;  %p1332_p2 = scmp.ge.s32.totalorder %s1094_s22, 1 }
  0x31   : > { %p199_p5 = pnand %p1332_p2, %p1331_p1 }
  0x32   : > { %s1239_s10 = sand.u32 (!%p199_p5), 1, %s1078_s18  }
  0x33   : > { %202 = sbr.rel (%p199_p5) target bundleno = 371 (0x173), region = 36  ;;  %s890_s12 = sshll.u32 (!%p199_p5), %s1239_s10, 3 }
  0x34   : > { %s205_s16 = scalar_lea.sflag (!%p199_p5), [#allocation4], %s1239_s10  ;;  %s208_s14 = scalar_lea.vmem (!%p199_p5), [#allocation3], %s890_s12 }
  0x3a   : > { %1065 = dma.done.wait (%p1175_p8), %s205_s16, 128  }
  0x3b   : > { %1067 = vsyncadd (%p1175_p8), %s205_s16, 4294967168  ;;  %v1097_v0 = vmov 0.0   ;;  %v1098_v1 = vmov 0   ;;  %v235_v2 = vld [vmem:[%s208_s14] sm:$0xff]  ;;  %vm242_vm0 = vcmask 1043456   ;;  %vm272_vm1 = vcmask 31744  }
  0x3c   : > { %346 = vmatprep.mubr.f32.mxu1 %v1097_v0  ;;  %583 = vmatprep.mubr.f32.mxu0 %v1097_v0  ;;  %v237_v3 = vld [vmem:[%s1323_s3] sm:$0xf]  ;;  %v238_v4 = vmul.f32 %v235_v2, %v235_v2  ;;  %s772_s0 = sld [smem:[#allocation2]]  ;;  %s898_s23 = sshll.u32 %s1086_s20, 7 }
  0x3d   : > { %973 = vset.pattern.permute.xlu0 %v1098_v1  ;;  %v236_v21 = vld [vmem:[%s1322_s2] sm:$0xf]  ;;  %s232_s25 = scalar_lea.vmem [#allocation6], %s890_s12  ;;  %s1271_s7 = scalar_lea.hbm %s1324_s4, %s898_s23 }
  0x3e   : > { %747 = vperm.xlu0 %973, %v237_v3   ;;  %v240_v5 = vcombine.high %v238_v4, %v238_v4  ;;  %v243_v6 = vsel %vm242_vm0, %v238_v4, 0.0  ;;  %v274_v23 = vsel %vm272_vm1, %v236_v21, 0  ;;  %s798_s26 = sshll.u32 %s232_s25, 4  ;;  %s782_s8 = scalar_lea.sflag [#allocation5], %s1239_s10  ;;  %s1273_s26 = int_to_ptr.vmem [resolvable:$true] %s798_s26 }
  0x3f   : > { %v244_v7 = vrot.slane %v243_v6, 4  ;;  %v347_v24 = vand.u32 4294901760, %v274_v23  ;;  %s1012_s9 = scalar_lea.vmem %s1273_s26, 128  ;;  %p1333_p9 = scmp.ne.s32.totalorder %s1328_s29, 0 }
  0x40   : > { %v250_v8 = vsel %vm242_vm0, %v240_v5, 0.0  ;;  %p1013_p8 = scmp.ne.s32.totalorder %s1273_s26, %s1012_s9  ;;  %s1099_s20 = smov [#allocation6]  }
  0x41   : > { %v245_v9 = vadd.f32 %v244_v7, %v243_v6  ;;  %v251_v10 = vrot.slane %v250_v8, 4  ;;  %v348_v25 = vsub.f32 %v274_v23, %v347_v24  ;;  %s1016_s12 = sshll.u32 %s1099_s20, 4  ;;  %s1017_s12 = int_to_ptr.vmem [resolvable:$false] %s1016_s12 }
  0x42   : > { %v773_v4 = vstv %s772_s0  ;;  %p1014_p11 = pnand %p1013_p8, %p1333_p9  ;;  %s1018_s16 = scalar_lea.vmem %s1017_s12, 256 }
  0x43   : > { %v246_v11 = vrot.slane %v245_v9, 2  ;;  %v252_v12 = vadd.f32 %v251_v10, %v250_v8  ;;  %v349_v28 = vand.u32 4294901760, %v348_v25  ;;  %p1019_p7 = scmp.lt.s32.totalorder %s1273_s26, %s1017_s12  ;;  %p1020_p13 = scmp.lt.s32.totalorder %s1018_s16, %s1012_s9 }
  0x44   : > { %p1015_p0 = pneg %p1014_p11 }
  0x45   : > { %v247_v13 = vadd.f32 %v246_v11, %v245_v9  ;;  %v253_v14 = vrot.slane %v252_v12, 2  ;;  %v350_v31 = vsub.f32 %v348_v25, %v349_v28  ;;  %p1021_p3 = por %p1020_p13, %p1019_p7 }
  0x47   : > { %v248_v15 = vrot.slane %v247_v13, 1  ;;  %v254_v16 = vadd.f32 %v253_v14, %v252_v12  ;;  %v351_v38 = vand.u32 4294901760, %v350_v31  ;;  %p1022_p6 = pnand %p1021_p3, %p1015_p0 }
  0x49   : > { %v249_v17 = vadd.f32 %v248_v15, %v247_v13  ;;  %v255_v18 = vrot.slane %v254_v16, 1 }
  0x4b   : > { %v256_v19 = vadd.f32 %v255_v18, %v254_v16  ;;  %v257_v20 = vmax.f32 %v249_v17, 1e-24 }
  0x4d   : > { %v258_v22 = vmax.f32 %v256_v19, 1e-24  ;;  %974 = vrsqrt.f32 %v257_v20 }
  0x4f   : > { %976 = vrsqrt.f32 %v258_v22 }
  0x57   : > { %v975_v26 = vpop.eup %974 }
  0x58   : > { %v266_v46 = vmul.f32 %v975_v26, %v975_v26 }
  0x59   : > { %v977_v27 = vpop.eup %976 }
  0x5a   : > { %v263_v29 = vcombine.low %v975_v26, %v977_v27  ;;  %v267_v47 = vmul.f32 %v977_v27, %v977_v27  ;;  %v268_v48 = vmul.f32 %v266_v46, %v249_v17 }
  0x5c   : > { %v265_v30 = vmul.f32 %v263_v29, %v235_v2  ;;  %v269_v50 = vmul.f32 %v267_v47, %v256_v19 }
  0x5e   : > { %v271_v32 = vcombine.high %v265_v30, %v265_v30  ;;  %v276_v33 = vsel %vm242_vm0, %v265_v30, 0 }
  0x5f   : > { %v282_v34 = vand.u32 4294901760, %v276_v33 }
  0x60   : > { %v278_v35 = vsel %vm242_vm0, %v271_v32, 0 }
  0x61   : > { %v280_v36 = vand.u32 4294901760, %v278_v35  ;;  %v365_v37 = vsub.f32 %v276_v33, %v282_v34 }
  0x63   : > { %281 = vmatprep.subr.mxu1 %v280_v36  ;;  %518 = vmatprep.subr.mxu0 %v280_v36  ;;  %v359_v39 = vsub.f32 %v278_v35, %v280_v36  ;;  %v366_v40 = vand.u32 4294901760, %v365_v37 }
  0x64   : > { %283 = vmatpush1.msra.mxu1 %v282_v34  ;;  %520 = vmatpush1.msra.mxu0 %v282_v34 }
  0x65   : > { %352 = vmatmul.mubr.f32.vlgmr.msra.gmra.mrb[0].mxu1 %v351_v38  ;;  %587 = vmatmul.mubr.f32.vlgmr.msra.gmra.mrb[0].mxu0 %v349_v28  ;;  %v360_v41 = vand.u32 4294901760, %v359_v39  ;;  %v367_v42 = vsub.f32 %v365_v37, %v366_v40 }
  0x66   : > { %432 = vmatprep.mubr.f32.mxu1 %v1097_v0  ;;  %663 = vmatprep.mubr.f32.mxu0 %v1097_v0 }
  0x67   : > { %v361_v43 = vsub.f32 %v359_v39, %v360_v41  ;;  %596 = vmatprep.subr.mxu0 %v360_v41  ;;  %v368_v44 = vand.u32 4294901760, %v367_v42 }
  0x68   : > { %600 = vmatpush1.msra.mxu0 %v366_v40 }
  0x69   : > { %v362_v45 = vand.u32 4294901760, %v361_v43  ;;  %672 = vmatprep.subr.mxu0 %v280_v36 }
  0x6b   : > { %363 = vmatprep.subr.mxu1 %v362_v45 }
  0x6c   : > { %369 = vmatpush1.msra.mxu1 %v368_v44 }
  0x6d   : > { %434 = vmatmul.mubr.f32.vlgmr.msra.gmra.mrb[0].mxu1 %v347_v24  ;;  %665 = vmatmul.mubr.f32.vlgmr.msra.gmra.mrb[0].mxu0 %v347_v24 }
  0x6e   : > { %442 = vmatprep.subr.mxu1 %v359_v39  ;;  %508 = vmatprep.mubr.f32.mxu1 %v1097_v0 }
  0x6f   : > { %445 = vmatpush1.msra.mxu1 %v365_v37  ;;  %674 = vmatpush1.msra.mxu0 %v282_v34 }
  0x70   : > { %737 = vmatprep.mubr.f32.mxu0 %v1097_v0 }
  0x75   : > { %511 = vmatmul.mubr.f32.vlgmr.msra.gmra.mrb[0].mxu1 %v348_v25  ;;  %739 = vmatmul.mubr.f32.vlgmr.msra.gmra.mrb[0].mxu0 %v347_v24 }
  0xbd   : > { %v748_v49 = vpop.permute.xlu0 %747 }
  0xbe   : > { %v750_v56 = vadd.f32 %v748_v49, %v268_v48  ;;  %v751_v58 = vadd.f32 %v748_v49, %v269_v50 }
 0x148   : > { %v512_v51 = vpop.f32.mrb[0].mxu1  ;;  %v740_v52 = vpop.f32.mrb[0].mxu0 }
 0x149   : > { %v899_v53 = vadd.f32 %v740_v52, %v512_v51  ;;  %v514_v54 = vpop.f32.mrb[1].mxu1  ;;  %v742_v55 = vpop.f32.mrb[1].mxu0 }
 0x14a   : > { %v900_v57 = vadd.f32 %v742_v55, %v514_v54 }
 0x14b   : > { %v752_v59 = vmul.f32 2.0, %v899_v53 }
 0x14c   : > { %v753_v60 = vmul.f32 2.0, %v900_v57 }
 0x14d   : > { %v754_v61 = vsub.f32 %v750_v56, %v752_v59 }
 0x14e   : > { %v755_v62 = vsub.f32 %v751_v58, %v753_v60 }
 0x14f   : > { %v756_v63 = vmax.f32 %v754_v61, 0.0 }
 0x150   : > { %v757_v0 = vmax.f32 %v755_v62, 0.0 }
 0x151   : > { %978 = vrsqrt.f32 %v756_v63  ;;  %vm760_vm2 = vcmp.eq.f32.partialorder %v756_v63, inf  ;;  %v763_v5 = vand.u32 2147483648, %v756_v63  ;;  %vm762_vm3 = vcmp.eq.f32.partialorder %v756_v63, 0.0 }
 0x152   : > { %980 = vrsqrt.f32 %v757_v0  ;;  %vm767_vm4 = vcmp.eq.f32.partialorder %v757_v0, inf  ;;  %v770_v8 = vand.u32 2147483648, %v757_v0  ;;  %vm769_vm5 = vcmp.eq.f32.partialorder %v757_v0, 0.0 }
 0x15b   : > { %v979_v1 = vpop.eup %978 }
 0x15c   : > { %v981_v2 = vpop.eup %980  ;;  %v759_v3 = vmul.f32 %v979_v1, %v756_v63 }
 0x15d   : > { %v766_v6 = vmul.f32 %v981_v2, %v757_v0 }
 0x15e   : > { %v761_v7 = vsel %vm760_vm2, %v756_v63, %v759_v3 }
 0x15f   : > { %v764_v9 = vsel %vm762_vm3, %v763_v5, %v761_v7  ;;  %v768_v10 = vsel %vm767_vm4, %v757_v0, %v766_v6 }
 0x160   : > { %v771_v11 = vsel %vm769_vm5, %v770_v8, %v768_v10  ;;  %v774_v12 = vmul.f32 %v773_v4, %v764_v9 }
 0x161   : > { %v775_v13 = vmul.f32 %v773_v4, %v771_v11 }
 0x163   : > { %v778_v14 = vcombine.low %v774_v12, %v775_v13 }
 0x165   : > { %780 = vst [vmem:[%s232_s25] sm:$0xff] %v778_v14 }
 0x166   : > { %1025 = shalt.err (!%p1022_p6)
}
 0x167   : > { %s1026_s10 = scalar_lea.hbm %s1271_s7, 128  ;;  %s1030_s13 = scalar_lea.hbm %s1324_s4, 256 }
 0x168   : > { %p1027_p4 = scmp.ne.s32.totalorder %s1271_s7, %s1026_s10  ;;  %p1031_p1 = scmp.lt.u32.totalorder %s1271_s7, %s1324_s4 }
 0x169   : > { %p1032_p2 = scmp.lt.u32.totalorder %s1030_s13, %s1026_s10  ;;  %p1034_p8 = scmp.lt.u32.totalorder %s1026_s10, %s1271_s7 }
 0x16a   : > { %p1028_p10 = pnand %p1027_p4, %p1333_p9 }
 0x16b   : > { %p1033_p5 = por %p1032_p2, %p1031_p1 }
 0x16c   : > { %p1029_p12 = pneg %p1028_p10 }
 0x16d   : > { %p1035_p11 = por %p1034_p8, %p1033_p5 }
 0x16f   : > { %p1036_p0 = pnand %p1035_p11, %p1029_p12 }
 0x171   : > { %1039 = shalt.err (!%p1036_p0)
}
 0x172   : > { %911 = dma.vmem_to_hbm [thread:$0]  (%p1333_p9), %s1273_s26, 128, %s1271_s7, %s782_s8  }
 0x173 PF: > { %s810_s0 = sand.u32 1, %s1074_s17   ;;  %p1334_p7 = scmp.ne.s32.totalorder %s1329_s5, 0 }
 0x174   : > { %p1335_p13 = scmp.ge.s32.totalorder %s1094_s22, 2  ;;  %s811_s23 = scalar_lea.sflag [#allocation5], %s810_s0 }
 0x176   : > { %p918_p3 = pnand %p1335_p13, %p1334_p7 }
 0x178   : > { %1069 = dma.done.wait (!%p918_p3), %s811_s23, 128  }
 0x179   : > { %1071 = vsyncadd (!%p918_p3), %s811_s23, 4294967168  ;;  %s21_s22 = sadd.s32 1, %s1094_s22   ;;  %s1336_s17 = smov %s1078_s18 }
 0x17a   : > { %p18_p6 = scmp.ge.s32.totalorder %s21_s22, 4   ;;  %s1337_s18 = smov %s1082_s19 }
 0x17b   : > { %s1338_s19 = smov %s1184_s30  ;;  %s1339_s20 = smov %s1090_s21 }
 0x17c   : > { %s1340_s21 = smov %s1342_s24  ;;  %20 = sbr.rel (!%p18_p6) target bundleno = 8 (0x8), region = 81 }
 0x183   :  { %816 = vsyncpa [#allocation4], 1 }
 0x184   :  { %818 = vsyncpa [#allocation4 + $0x1], 1 }
 0x185   :  { %819 = vsyncpa [#allocation5], 1 }
 0x186   :  { %821 = vsyncpa [#allocation5 + $0x1], 1 }

</bundles_post_ra>
